<compile_context>
chip_gen: v7x
topology: tpu7x:2x2x1
jax: 0.10.0
libtpu: 0.0.40
codegen_flags: <defaults>
</compile_context>

<pallas_src>
import functools

import jax
import jax.numpy as jnp
from jax.experimental import pallas as pl
from jax.experimental.pallas import tpu as pltpu

_LANE = 128
_SUBLANE = 8


def _round_up(v, m):
    return ((v + m - 1) // m) * m


def sage_pool_kernel(nodes_ref, params_ref, o_ref):
    # nodes_ref : [N_pad, 2]   col 0 = root features x_i, col 1 = mean-aggregated neighbors
    # params_ref: [8, F_pad]   row 0 = W_l (neighbor), row 1 = W_r (root), row 2 = bias
    # o_ref     : [1, F_pad]   pooled graph embedding (lane-dense)
    x_col = nodes_ref[:, 0:1]      # [N_pad, 1]
    agg_col = nodes_ref[:, 1:2]    # [N_pad, 1]
    w_l = params_ref[0:1, :]       # [1, F_pad]
    w_r = params_ref[1:2, :]       # [1, F_pad]
    bias = params_ref[2:3, :]      # [1, F_pad]

    # SAGEConv(1, F): h_i = mean_{j in N(i)}(x_j) * W_l + x_i * W_r + b
    # ([N,1]x[1,F] outer-product FMAs -> VPU only, no MXU).
    h = agg_col * w_l + x_col * w_r + bias          # [N_pad, F_pad]

    # F.dropout(p=0.2) is identity at inference (training=False).
    # global_max_pool with batch == zeros -> max over all nodes. Padded rows are
    # replicas of row 0, so they do not change the max.
    o_ref[...] = jnp.max(h, axis=0, keepdims=True)


@jax.jit
def sergio_gcn_forward(x, edge_index, w_l, w_r, bias, edge_weights=None):
    """x: [N, 1] f32; edge_index: [2, E] int32; w_l/w_r/bias: [1, F_out]; -> [1, F_out]."""
    del edge_weights  # PyG SAGEConv does not consume edge_weight -> unweighted neighbor mean.
    n = x.shape[0]
    f_out = w_l.shape[-1]
    f_pad = _round_up(f_out, _LANE)
    n_pad = _round_up(n, _SUBLANE)

    src = edge_index[0]
    dst = edge_index[1]

    # Glue (XLA, O(E)): mean aggregation of source features onto destination nodes.
    agg_sum = jnp.zeros((n, 1), dtype=x.dtype).at[dst].add(x[src])
    deg = jnp.zeros((n, 1), dtype=x.dtype).at[dst].add(1.0)
    agg = agg_sum / jnp.maximum(deg, 1.0)           # isolated nodes aggregate to 0

    # Pack node operand [N_pad, 2]; pad extra rows with copies of row 0 (max-invariant).
    nodes = jnp.concatenate([x, agg], axis=1)       # [N, 2]
    if n_pad != n:
        pad_rows = jnp.broadcast_to(nodes[0:1, :], (n_pad - n, 2))
        nodes = jnp.concatenate([nodes, pad_rows], axis=0)

    # Pack parameter slab [8, F_pad] (sublane-padded, lane-padded with zeros).
    params = jnp.zeros((_SUBLANE, f_pad), dtype=x.dtype)
    params = params.at[0, :f_out].set(w_l.reshape(-1))
    params = params.at[1, :f_out].set(w_r.reshape(-1))
    params = params.at[2, :f_out].set(bias.reshape(-1))

    out = pl.pallas_call(
        sage_pool_kernel,
        out_shape=jax.ShapeDtypeStruct((1, f_pad), x.dtype),
        in_specs=[
            pl.BlockSpec(memory_space=pltpu.MemorySpace.VMEM),
            pl.BlockSpec(memory_space=pltpu.MemorySpace.VMEM),
        ],
        out_specs=pl.BlockSpec(memory_space=pltpu.MemorySpace.VMEM),
    )(nodes, params)
    return out[:, :f_out]


if __name__ == "__main__":
    key = jax.random.PRNGKey(0)
    k_x, k_e1, k_e2, k_wl, k_wr, k_b = jax.random.split(key, 6)

    n_nodes = 16      # single graph -> batch of zeros in the reference module
    n_edges = 48
    f_out = 32        # SERGIOGCN(output_size=32); in_channels fixed to 1

    x = jax.random.normal(k_x, (n_nodes, 1), dtype=jnp.float32)
    src = jax.random.randint(k_e1, (n_edges,), 0, n_nodes, dtype=jnp.int32)
    dst = jax.random.randint(k_e2, (n_edges,), 0, n_nodes, dtype=jnp.int32)
    edge_index = jnp.stack([src, dst], axis=0)

    # SAGEConv(1, f_out) parameters: lin_l (neighbor path + bias), lin_r (root path).
    w_l = jax.random.normal(k_wl, (1, f_out), dtype=jnp.float32) * 0.5
    w_r = jax.random.normal(k_wr, (1, f_out), dtype=jnp.float32) * 0.5
    bias = jax.random.normal(k_b, (1, f_out), dtype=jnp.float32) * 0.1

    out = sergio_gcn_forward(x, edge_index, w_l, w_r, bias)
    out = jax.block_until_ready(out)

    # Pure-JAX reference (SAGEConv mean aggregation -> eval dropout -> global max pool).
    agg_sum = jnp.zeros((n_nodes, 1), jnp.float32).at[dst].add(x[src])
    deg = jnp.zeros((n_nodes, 1), jnp.float32).at[dst].add(1.0)
    agg = agg_sum / jnp.maximum(deg, 1.0)
    ref = jnp.max(agg * w_l + x * w_r + bias, axis=0, keepdims=True)

    assert out.shape == (1, f_out)
    assert jnp.allclose(out, ref, atol=1e-5, rtol=1e-5)
    print("KERNEL_OK")
</pallas_src>

<mosaic_0001>
module attributes {stable_mosaic.version = 11 : i64} {
  func.func private @main(%arg0: i32) attributes {dimension_semantics = [#tpu.dimension_semantics<core_parallel>], iteration_bounds = array<i64: 2>, tpu.core_type = #tpu.core_type<sc_scalar_subcore>, window_params = []} {
    return
  }
}

module attributes {stable_mosaic.version = 11 : i64} {
  func.func private @main(%arg0: i32) attributes {dimension_semantics = [#tpu.dimension_semantics<core_parallel>], iteration_bounds = array<i64: 2>, tpu.core_type = #tpu.core_type<sc_scalar_subcore>, window_params = []} {
    return
  }
}

module attributes {stable_mosaic.version = 11 : i64} {
  func.func @sage_pool_kernel(%arg0: memref<16x2xf32, #tpu.memory_space<vmem>>, %arg1: memref<8x128xf32, #tpu.memory_space<vmem>>, %arg2: memref<1x128xf32, #tpu.memory_space<vmem>>) attributes {dimension_semantics = [], scalar_prefetch = 0 : i64, scratch_operands = 0 : i64, tpu.core_type = #tpu.core_type<tc>} {
    %c0 = arith.constant 0 : index
    %c0_0 = arith.constant 0 : index
    %0 = vector.load %arg0[%c0, %c0_0] : memref<16x2xf32, #tpu.memory_space<vmem>>, vector<16x1xf32>
    %c0_1 = arith.constant 0 : index
    %c1 = arith.constant 1 : index
    %1 = vector.load %arg0[%c0_1, %c1] : memref<16x2xf32, #tpu.memory_space<vmem>>, vector<16x1xf32>
    %c0_2 = arith.constant 0 : index
    %c0_3 = arith.constant 0 : index
    %2 = vector.load %arg1[%c0_2, %c0_3] : memref<8x128xf32, #tpu.memory_space<vmem>>, vector<1x128xf32>
    %c1_4 = arith.constant 1 : index
    %c0_5 = arith.constant 0 : index
    %3 = vector.load %arg1[%c1_4, %c0_5] : memref<8x128xf32, #tpu.memory_space<vmem>>, vector<1x128xf32>
    %c2 = arith.constant 2 : index
    %c0_6 = arith.constant 0 : index
    %4 = vector.load %arg1[%c2, %c0_6] : memref<8x128xf32, #tpu.memory_space<vmem>>, vector<1x128xf32>
    %5 = vector.broadcast %1 : vector<16x1xf32> to vector<16x128xf32>
    %6 = vector.broadcast %2 : vector<1x128xf32> to vector<16x128xf32>
    %7 = arith.mulf %5, %6 : vector<16x128xf32>
    %8 = vector.broadcast %0 : vector<16x1xf32> to vector<16x128xf32>
    %9 = vector.broadcast %3 : vector<1x128xf32> to vector<16x128xf32>
    %10 = arith.mulf %8, %9 : vector<16x128xf32>
    %11 = arith.addf %7, %10 : vector<16x128xf32>
    %12 = vector.broadcast %4 : vector<1x128xf32> to vector<16x128xf32>
    %13 = arith.addf %11, %12 : vector<16x128xf32>
    %cst = arith.constant dense<0xFF800000> : vector<128xf32>
    %14 = vector.multi_reduction <maximumf>, %13, %cst [0] : vector<16x128xf32> to vector<128xf32>
    %15 = vector.shape_cast %14 : vector<128xf32> to vector<1x128xf32>
    %c0_7 = arith.constant 0 : index
    %c0_8 = arith.constant 0 : index
    %16 = vector.load %arg2[%c0_7, %c0_8] : memref<1x128xf32, #tpu.memory_space<vmem>>, vector<1x128xf32>
    tpu.vector_store %arg2[%c0_7, %c0_8], %15 {strides = array<i32>} : memref<1x128xf32, #tpu.memory_space<vmem>>, vector<1x128xf32>,
    return
  }
}

</mosaic_0001>

<bundles_post_ra>
// kernel: sergio_gcn_forward.1
= control target key start
LH: loop header
LB: loop body
LE: loop exit
PB: predicated region body
PF: predicated region fallthrough
CT: control target
= control target key end

     0   :  { %v110_v1 = vmov 0   ;;  %v111_v2 = vmov 1   ;;  %s155_s0 = inlined_call_operand.vmem [shape: f32[16,2], index: 0, kind: input, shape index: {}]   ;;  %s156_s1 = inlined_call_operand.vmem [shape: f32[8,128], index: 1, kind: input, shape index: {}]   ;;  %s157_s2 = inlined_call_operand.hbm [shape: f32[1,128], index: 2, kind: output, shape index: {}]  }
   0x1   :  { %v12_v0 = vld [vmem:[%s155_s0] sm:$0xff]  ;;  %84 = vset.pattern.permute.xlu1 %v110_v1  ;;  %83 = vset.pattern.permute.xlu0 %v111_v2 }
   0x2   :  { %7 = vsyncpa [#allocation3], 0  ;;  %34 = vperm.xlu1 %84, %v12_v0   ;;  %19 = vperm.xlu0 %83, %v12_v0   ;;  %v13_v3 = vld [vmem:[%s155_s0 + $0x8] sm:$0xff]  ;;  %v78_v4 = vld [vmem:[%s156_s1 + $0x1] ss:$0 sm:$0xff]  ;;  %s112_s18 = smov [#allocation2]  }
   0x3   :  { %v77_v5 = vld [vmem:[%s156_s1] ss:$0 sm:$0xff]  ;;  %v79_v15 = vld [vmem:[%s156_s1 + $0x2] ss:$0 sm:$0xff]  ;;  %s69_s19 = sshll.u32 %s112_s18, 4  ;;  %s70_s19 = int_to_ptr.vmem [resolvable:$true] %s69_s19 }
   0x4   :  { %s86_s20 = scalar_lea.vmem %s70_s19, 16  ;;  %s90_s21 = scalar_lea.vmem %s70_s19, 32 }
   0x5   :  { %p87_p0 = scmp.ne.s32.totalorder %s70_s19, %s86_s20  ;;  %p91_p1 = scmp.lt.s32.totalorder %s70_s19, %s70_s19 }
   0x6   :  { %38 = vperm.xlu1 %84, %v13_v3   ;;  %24 = vperm.xlu0 %83, %v13_v3   ;;  %p92_p2 = scmp.lt.s32.totalorder %s90_s21, %s86_s20 }
   0x8   :  { %p93_p3 = por %p92_p2, %p91_p1 }
   0xa   :  { %85 = vset.pattern.permute.xlu0 %v110_v1  ;;  %p94_p4 = pnand %p93_p3, %p87_p0 }
  0x81   :  { %v35_v6 = vpop.permute.xlu1 %34  ;;  %v20_v7 = vpop.permute.xlu0 %19 }
  0x82   :  { %v45_v8 = vmul.f32 %v78_v4, %v35_v6  ;;  %v31_v9 = vmul.f32 %v77_v5, %v20_v7 }
  0x84   :  { %v47_v12 = vadd.f32 %v45_v8, %v31_v9 }
  0x85   :  { %v39_v10 = vpop.permute.xlu1 %38  ;;  %v25_v11 = vpop.permute.xlu0 %24 }
  0x86   :  { %v46_v13 = vmul.f32 %v78_v4, %v39_v10  ;;  %v32_v14 = vmul.f32 %v77_v5, %v25_v11  ;;  %v53_v17 = vadd.f32 %v79_v15, %v47_v12 }
  0x88   :  { %v48_v16 = vadd.f32 %v46_v13, %v32_v14 }
  0x8a   :  { %v54_v18 = vadd.f32 %v79_v15, %v48_v16 }
  0x8c   :  { %v55_v19 = vmax.f32 %v53_v17, %v54_v18 }
  0x8e   :  { %v56_v20 = vrot.slane %v55_v19, 4 }
  0x90   :  { %v57_v21 = vmax.f32 %v55_v19, %v56_v20 }
  0x92   :  { %v58_v22 = vrot.slane %v57_v21, 2 }
  0x94   :  { %v59_v23 = vmax.f32 %v57_v21, %v58_v22 }
  0x96   :  { %v60_v24 = vrot.slane %v59_v23, 1 }
  0x98   :  { %v61_v25 = vmax.f32 %v59_v23, %v60_v24 }
  0x9a   :  { %62 = vst [vmem:[#allocation2] sm:$0x1] %v61_v25 }
  0x9b   :  { %97 = shalt.err (!%p94_p4)
}
  0x9c   :  { %s98_s23 = scalar_lea.hbm %s157_s2, 16 }
  0x9d   :  { %p99_p5 = scmp.ne.s32.totalorder %s157_s2, %s98_s23  ;;  %p102_p6 = scmp.lt.u32.totalorder %s98_s23, %s157_s2 }
  0x9f   :  { %p104_p7 = pnand %p102_p6, %p99_p5 }
  0xa1   :  { %107 = shalt.err (!%p104_p7)
}
  0xa2   :  { %72 = dma.vmem_to_hbm [thread:$0]  %s70_s19, 16, %s157_s2, [#allocation3]  }
  0xa3   :  { %108 = dma.done.wait [#allocation3], 16  }
  0xa4   :  { %109 = vsyncadd [#allocation3], 4294967280 }
  0xa5   :  { %76 = vsyncpa [#allocation3], 1 }

</bundles_post_ra>
